<compile_context>
chip_gen: v5e
topology: v5e:2x2
jax: 0.10.0
libtpu: 0.0.40
codegen_flags: <defaults>
</compile_context>

<pallas_src>
import jax
import jax.numpy as jnp
from jax.experimental import pallas as pl
from jax.experimental.pallas import tpu as pltpu

BN_EPS = 1e-5
LANE = 128
NODE_ALIGN = 256                      # n_p is a multiple of this -> chosen tiles divide it
VMEM_LIMIT = 48 * 1024 * 1024         # safe under v7x's 64 MiB; footprint here is ~3 MiB
X_RESIDENT_BUDGET = 8 * 1024 * 1024   # keep whole padded bf16 x VMEM-resident below this


def _round_up(x, m):
    return (x + m - 1) // m * m


def padded_num_nodes(n):
    return _round_up(n, NODE_ALIGN)


def _choose_tiles(n_p):
    """Pick (row_tile, k_tile) that both divide n_p; prefer big k tiles (DMA efficiency)
    and >= 2 row tiles (both v7x TensorCores via the 'parallel' axis)."""
    k_tile = 256
    for cand in (1024, 512, 256):
        if n_p % cand == 0:
            k_tile = cand
            break
    row_tile = 128
    for cand in (512, 256, 128):
        if n_p % cand == 0 and n_p // cand >= 2:
            row_tile = cand
            break
    if n_p % row_tile != 0:            # degenerate tiny graph
        row_tile = n_p
    return row_tile, k_tile


# --------------------------- fused Pallas kernel ---------------------------

def _make_gcn_kernel(k_tile, x_resident):
    """out = ReLU(A_norm @ (x @ W_fold) + b_fold), accumulated over the K (col-tile) axis.

    The output block is resident across K (index map (i, 0)) and doubles as the f32
    accumulator: zeroed at k == 0, bias + ReLU applied at the last k.
    """

    def kernel(a_ref, x_ref, w_ref, b_ref, out_ref):
        k = pl.program_id(1)

        @pl.when(k == 0)
        def _():
            out_ref[...] = jnp.zeros_like(out_ref)

        # Recompute the k-th slice of hw = x @ W_fold per row tile: the MXU has slack,
        # the kernel is bound by streaming A from HBM, and this kills the hw round trip.
        if x_resident:
            start = pl.multiple_of(k * k_tile, k_tile)
            x_blk = x_ref[pl.ds(start, k_tile), :]
        else:
            x_blk = x_ref[...]
        hw_k = jnp.dot(x_blk, w_ref[...],
                       preferred_element_type=jnp.float32).astype(jnp.bfloat16)

        out_ref[...] += jnp.dot(a_ref[...], hw_k,
                                preferred_element_type=jnp.float32)

        @pl.when(k == pl.num_programs(1) - 1)
        def _():
            # bias + ReLU fused into the finalize (Dropout = identity in eval)
            out_ref[...] = jnp.maximum(out_ref[...] + b_ref[...], 0.0)

    return kernel


# --------------------------- wrapper ---------------------------

def gnn_block_forward(x, a_p, params):
    """GNNBlock eval forward: ReLU(BN(GCNConv(x))) with BN folded into W / b.

    `a_p` is the pre-padded bf16 normalized adjacency from prepare_gcn_operator
    (built once per graph, NOT per forward call)."""
    n, in_dim = x.shape
    n_p = a_p.shape[0]
    out_dim = params["w"].shape[1]
    assert a_p.shape == (n_p, n_p) and n_p == padded_num_nodes(n)

    row_tile, k_tile = _choose_tiles(n_p)
    assert n_p % row_tile == 0 and n_p % k_tile == 0   # full output coverage guaranteed

    in_p = _round_up(in_dim, LANE)
    out_p = _round_up(out_dim, LANE)

    # ---- fold inference BatchNorm into the GCN weight / bias (exact in eval mode) ----
    scale = params["gamma"] * jax.lax.rsqrt(params["var"] + BN_EPS)          # [out]
    w_fold = params["w"] * scale[None, :]                                     # [in, out]
    b_fold = (params["b"] - params["mean"]) * scale + params["beta"]          # [out]

    # ---- pad small operands to lane-dense shapes (zero padding is exactly inert) ----
    x_p = jnp.zeros((n_p, in_p), jnp.bfloat16).at[:n, :in_dim].set(
        x.astype(jnp.bfloat16))
    w_p = jnp.zeros((in_p, out_p), jnp.bfloat16).at[:in_dim, :out_dim].set(
        w_fold.astype(jnp.bfloat16))
    b_p = jnp.zeros((1, out_p), jnp.float32).at[0, :out_dim].set(b_fold)

    x_resident = (n_p * in_p * 2) <= X_RESIDENT_BUDGET
    if x_resident:
        # fetched once, stays in VMEM; kernel slices the k-th chunk with pl.ds
        x_spec = pl.BlockSpec((n_p, in_p), lambda i, k: (0, 0))
    else:
        # large graphs: stream x k-tiles (overhead ~ in_p/row_tile of A traffic)
        x_spec = pl.BlockSpec((k_tile, in_p), lambda i, k: (k, 0))

    out_padded = pl.pallas_call(
        _make_gcn_kernel(k_tile, x_resident),
        out_shape=jax.ShapeDtypeStruct((n_p, out_p), jnp.float32),
        grid_spec=pltpu.PrefetchScalarGridSpec(
            num_scalar_prefetch=0,
            grid=(n_p // row_tile, n_p // k_tile),
            in_specs=[pl.BlockSpec((row_tile, k_tile), lambda i, k: (i, k)),  # A tile
                      x_spec,                                                 # x
                      pl.BlockSpec((in_p, out_p), lambda i, k: (0, 0)),       # W_fold
                      pl.BlockSpec((1, out_p), lambda i, k: (0, 0))],         # b_fold
            out_specs=pl.BlockSpec((row_tile, out_p), lambda i, k: (i, 0)),
        ),
        compiler_params=pltpu.CompilerParams(
            dimension_semantics=("parallel", "arbitrary"),
            vmem_limit_bytes=VMEM_LIMIT),
    )(a_p, x_p, w_p, b_p)

    return out_padded[:n, :out_dim]


# ---------------- plain-JAX glue (graph structure -> dense operator) ----------------

def build_gcn_adjacency(edge_index, edge_weight, num_nodes):
    """PyG GCNConv normalization: D^-1/2 (A + I) D^-1/2, messages flow src -> dst.

    Duplicate edges accumulate (matches PyG message passing, which sums per edge)."""
    src, dst = edge_index[0], edge_index[1]
    w = (jnp.ones(src.shape, jnp.float32) if edge_weight is None
         else edge_weight.astype(jnp.float32))
    a = jnp.zeros((num_nodes, num_nodes), jnp.float32).at[dst, src].add(w)
    a = a + jnp.eye(num_nodes, dtype=jnp.float32)          # add_self_loops
    deg = a.sum(axis=1)
    d_inv_sqrt = jnp.where(deg > 0, jax.lax.rsqrt(deg), 0.0)
    return d_inv_sqrt[:, None] * a * d_inv_sqrt[None, :]


def prepare_gcn_operator(edge_index, edge_weight, num_nodes):
    """Build the normalized adjacency once and pad/cast it to bf16 for the kernel.

    Kept OUT of the forward path: for a static graph the padded bf16 copy is reused
    across every forward call instead of re-materializing an N_p^2 tensor each time."""
    a = build_gcn_adjacency(edge_index, edge_weight, num_nodes)
    n_p = padded_num_nodes(num_nodes)
    a_p = jnp.zeros((n_p, n_p), jnp.bfloat16).at[:num_nodes, :num_nodes].set(
        a.astype(jnp.bfloat16))
    return a, a_p


def gnn_block_reference(x, a_norm, params):
    """Pure-JAX f32 reference of the eval-mode forward (for a tolerance check)."""
    h = a_norm @ (x @ params["w"]) + params["b"]
    inv_std = jax.lax.rsqrt(params["var"] + BN_EPS)
    h = params["gamma"] * (h - params["mean"]) * inv_std + params["beta"]
    return jnp.maximum(h, 0.0)


if __name__ == "__main__":
    in_channels, out_channels = 32, 64
    num_nodes = 512

    key = jax.random.PRNGKey(0)
    k = jax.random.split(key, 8)

    # node features
    x = jax.random.normal(k[0], (num_nodes, in_channels), jnp.float32)

    # bidirectional ring graph + deterministic random chords
    idx = jnp.arange(num_nodes, dtype=jnp.int32)
    ring_src = jnp.concatenate([idx, (idx + 1) % num_nodes])
    ring_dst = jnp.concatenate([(idx + 1) % num_nodes, idx])
    chord_src = jax.random.randint(k[1], (256,), 0, num_nodes, jnp.int32)
    chord_dst = jax.random.randint(k[2], (256,), 0, num_nodes, jnp.int32)
    edge_index = jnp.stack([jnp.concatenate([ring_src, chord_src]),
                            jnp.concatenate([ring_dst, chord_dst])])

    # deterministic parameters (GCNConv weight/bias + BatchNorm1d running stats/affine)
    params = {
        "w": 0.1 * jax.random.normal(k[3], (in_channels, out_channels), jnp.float32),
        "b": 0.01 * jnp.ones((out_channels,), jnp.float32),
        "gamma": 1.0 + 0.1 * jax.random.normal(k[4], (out_channels,), jnp.float32),
        "beta": 0.1 * jax.random.normal(k[5], (out_channels,), jnp.float32),
        "mean": 0.05 * jax.random.normal(k[6], (out_channels,), jnp.float32),
        "var": 1.0 + 0.5 * jax.nn.sigmoid(
            jax.random.normal(k[7], (out_channels,), jnp.float32)),
    }

    # graph operator built / padded once, outside the forward path (edge_attr=None)
    a_norm, a_padded = prepare_gcn_operator(edge_index, None, num_nodes)

    forward = jax.jit(gnn_block_forward)
    out = forward(x, a_padded, params)
    out = jax.block_until_ready(out)

    ref = gnn_block_reference(x, a_norm, params)
    assert out.shape == (num_nodes, out_channels)
    assert bool(jnp.all(jnp.isfinite(out)))
    max_err = float(jnp.max(jnp.abs(out - ref)))
    assert max_err < 5e-2, f"max abs err vs reference = {max_err}"
    print("KERNEL_OK")
</pallas_src>

<mosaic_0001>
module attributes {stable_mosaic.version = 11 : i64} {
  func.func @kernel(%arg0: i32, %arg1: i32, %arg2: memref<256x512xbf16, #tpu.memory_space<vmem>>, %arg3: memref<512x128xbf16, #tpu.memory_space<vmem>>, %arg4: memref<128x128xbf16, #tpu.memory_space<vmem>>, %arg5: memref<1x128xf32, #tpu.memory_space<vmem>>, %arg6: memref<256x128xf32, #tpu.memory_space<vmem>>) attributes {dimension_semantics = [#tpu.dimension_semantics<parallel>, #tpu.dimension_semantics<arbitrary>], iteration_bounds = array<i64: 2, 1>, scalar_prefetch = 0 : i64, scratch_operands = 0 : i64, tpu.core_type = #tpu.core_type<tc>, window_params = [{transform_indices = @transform_0, window_bounds = array<i64: 256, 512>}, {pipeline_mode = #tpu.pipeline_mode<synchronous>, transform_indices = @transform_1, window_bounds = array<i64: 512, 128>}, {pipeline_mode = #tpu.pipeline_mode<synchronous>, transform_indices = @transform_2, window_bounds = array<i64: 128, 128>}, {pipeline_mode = #tpu.pipeline_mode<synchronous>, transform_indices = @transform_3, window_bounds = array<i64: 1, 128>}, {transform_indices = @transform_4, window_bounds = array<i64: 256, 128>}]} {
    %c0_i32 = arith.constant 0 : i32
    %0 = arith.cmpi eq, %arg1, %c0_i32 : i32
    %1 = arith.extui %0 : i1 to i32
    %c0_i32_0 = arith.constant 0 : i32
    %2 = arith.cmpi ne, %1, %c0_i32_0 : i32
    scf.if %2 {
      %cst_12 = arith.constant 0.000000e+00 : f32
      %18 = vector.broadcast %cst_12 : f32 to vector<256x128xf32>
      %c0_13 = arith.constant 0 : index
      %c0_14 = arith.constant 0 : index
      %19 = vector.load %arg6[%c0_13, %c0_14] : memref<256x128xf32, #tpu.memory_space<vmem>>, vector<256x128xf32>
      tpu.vector_store %arg6[%c0_13, %c0_14], %18 {strides = array<i32>} : memref<256x128xf32, #tpu.memory_space<vmem>>, vector<256x128xf32>,
    } else {
    }
    %c512_i32 = arith.constant 512 : i32
    %3 = arith.muli %arg1, %c512_i32 : i32
    %4 = tpu.assume_multiple %3, 512 : i32
    %5 = arith.index_cast %4 : i32 to index
    %c0 = arith.constant 0 : index
    %6 = vector.load %arg3[%5, %c0] : memref<512x128xbf16, #tpu.memory_space<vmem>>, vector<512x128xbf16>
    %c0_1 = arith.constant 0 : index
    %c0_2 = arith.constant 0 : index
    %7 = vector.load %arg4[%c0_1, %c0_2] : memref<128x128xbf16, #tpu.memory_space<vmem>>, vector<128x128xbf16>
    %cst = arith.constant dense<0.000000e+00> : vector<512x128xf32>
    %8 = tpu.matmul %6, %7, %cst {dimension_numbers = #tpu.dot_dimension_numbers<[1], [0], [0], [1], [0, 0, 1, 1], [], []>} : vector<512x128xbf16>, vector<128x128xbf16>, vector<512x128xf32> -> vector<512x128xf32>
    %9 = arith.truncf %8 : vector<512x128xf32> to vector<512x128xbf16>
    %c0_3 = arith.constant 0 : index
    %c0_4 = arith.constant 0 : index
    %10 = vector.load %arg6[%c0_3, %c0_4] : memref<256x128xf32, #tpu.memory_space<vmem>>, vector<256x128xf32>
    %c0_5 = arith.constant 0 : index
    %c0_6 = arith.constant 0 : index
    %11 = vector.load %arg2[%c0_5, %c0_6] : memref<256x512xbf16, #tpu.memory_space<vmem>>, vector<256x512xbf16>
    %cst_7 = arith.constant dense<0.000000e+00> : vector<256x128xf32>
    %12 = tpu.matmul %11, %9, %cst_7 {dimension_numbers = #tpu.dot_dimension_numbers<[1], [0], [0], [1], [0, 0, 1, 1], [], []>} : vector<256x512xbf16>, vector<512x128xbf16>, vector<256x128xf32> -> vector<256x128xf32>
    %13 = arith.addf %10, %12 : vector<256x128xf32>
    %c0_8 = arith.constant 0 : index
    %c0_9 = arith.constant 0 : index
    %14 = vector.load %arg6[%c0_8, %c0_9] : memref<256x128xf32, #tpu.memory_space<vmem>>, vector<256x128xf32>
    tpu.vector_store %arg6[%c0_8, %c0_9], %13 {strides = array<i32>} : memref<256x128xf32, #tpu.memory_space<vmem>>, vector<256x128xf32>,
    %c0_i32_10 = arith.constant 0 : i32
    %15 = arith.cmpi eq, %arg1, %c0_i32_10 : i32
    %16 = arith.extui %15 : i1 to i32
    %c0_i32_11 = arith.constant 0 : i32
    %17 = arith.cmpi ne, %16, %c0_i32_11 : i32
    scf.if %17 {
      %c0_12 = arith.constant 0 : index
      %c0_13 = arith.constant 0 : index
      %18 = vector.load %arg6[%c0_12, %c0_13] : memref<256x128xf32, #tpu.memory_space<vmem>>, vector<256x128xf32>
      %c0_14 = arith.constant 0 : index
      %c0_15 = arith.constant 0 : index
      %19 = vector.load %arg5[%c0_14, %c0_15] : memref<1x128xf32, #tpu.memory_space<vmem>>, vector<1x128xf32>
      %20 = vector.broadcast %19 : vector<1x128xf32> to vector<256x128xf32>
      %21 = arith.addf %18, %20 : vector<256x128xf32>
      %cst_16 = arith.constant 0.000000e+00 : f32
      %22 = vector.broadcast %cst_16 : f32 to vector<256x128xf32>
      %23 = arith.maximumf %21, %22 : vector<256x128xf32>
      %c0_17 = arith.constant 0 : index
      %c0_18 = arith.constant 0 : index
      %24 = vector.load %arg6[%c0_17, %c0_18] : memref<256x128xf32, #tpu.memory_space<vmem>>, vector<256x128xf32>
      tpu.vector_store %arg6[%c0_17, %c0_18], %23 {strides = array<i32>} : memref<256x128xf32, #tpu.memory_space<vmem>>, vector<256x128xf32>,
    } else {
    }
    return
  }
  func.func @transform_0(%arg0: i32, %arg1: i32) -> (i32, i32) {
    %c0_i32 = arith.constant 0 : i32
    return %arg0, %arg1 : i32, i32
  }
  func.func @transform_1(%arg0: i32, %arg1: i32) -> (i32, i32) {
    %c0_i32 = arith.constant 0 : i32
    %c0_i32_0 = arith.constant 0 : i32
    %c0_i32_1 = arith.constant 0 : i32
    return %c0_i32, %c0_i32_0 : i32, i32
  }
  func.func @transform_2(%arg0: i32, %arg1: i32) -> (i32, i32) {
    %c0_i32 = arith.constant 0 : i32
    %c0_i32_0 = arith.constant 0 : i32
    %c0_i32_1 = arith.constant 0 : i32
    return %c0_i32, %c0_i32_0 : i32, i32
  }
  func.func @transform_3(%arg0: i32, %arg1: i32) -> (i32, i32) {
    %c0_i32 = arith.constant 0 : i32
    %c0_i32_0 = arith.constant 0 : i32
    %c0_i32_1 = arith.constant 0 : i32
    return %c0_i32, %c0_i32_0 : i32, i32
  }
  func.func @transform_4(%arg0: i32, %arg1: i32) -> (i32, i32) {
    %c0_i32 = arith.constant 0 : i32
    %c0_i32_0 = arith.constant 0 : i32
    return %arg0, %c0_i32 : i32, i32
  }
}

</mosaic_0001>

<bundles_post_ra>
// kernel: gnn_block_forward.1
= control target key start
LH: loop header
LB: loop body
LE: loop exit
PB: predicated region body
PF: predicated region fallthrough
CT: control target
= control target key end

     0   :  { %s2462_s15 = smov 0   ;;  %s2464_s16 = smov 0   ;;  %s3035_s0 = inlined_call_operand.vmem [shape: bf16[512,512], index: 0, kind: input, shape index: {}]   ;;  %s3036_s1 = inlined_call_operand.vmem [shape: bf16[512,128], index: 1, kind: input, shape index: {}]   ;;  %s3037_s2 = inlined_call_operand.vmem [shape: bf16[128,128], index: 2, kind: input, shape index: {}]   ;;  %s3038_s3 = inlined_call_operand.vmem [shape: f32[1,128], index: 3, kind: input, shape index: {}]   ;;  %s3039_s4 = inlined_call_operand.vmem [shape: f32[512,128], index: 4, kind: output, shape index: {}]  }
   0x1   :  { %s2466_s17 = smov 0  }
   0x2 LB: > { %s26_s18 = sadd.s32 1, %s2431_s16  ;;  %p1842_p0 = scmp.ge.s32.totalorder %s2435_s17, 1  ;;  %s2435_s17 = sphi %s2466_s17, %s14_s17   ;;  %s2431_s16 = sphi %s2464_s16, %s3041_s16   ;;  %s2427_s15 = sphi %s2462_s15, %s3040_s15  }
   0x3   : > { %p28_p1 = scmp.ge.s32.totalorder %s26_s18, 2  ;;  %p183_p2 = scmp.lt.s32.totalorder %s2435_s17, 3 }
   0x5   : > { %s3043_s18 = smov (%p28_p1, %s26_s18), 0  ;;  %p184_p3 = pnand %p1842_p0, %p183_p2 }
   0x6   : > { %s1843_s5 = sshll.u32 (!%p184_p3), %s2427_s15, 5 }
   0x7   : > { %187 = sbr.rel (%p184_p3) target bundleno = 968 (0x3c8), region = 36  ;;  %p216_p4 = scmp.lt.s32.totalorder (!%p184_p3), %s1843_s5, 63 }
   0xc   : > { %v2306_v0 = vld [vmem:[%s3037_s2 + $0x38] sm:$0xff]  ;;  %v2305_v1 = vld [vmem:[%s3037_s2 + $0x30] sm:$0xff]  ;;  %v2304_v2 = vld [vmem:[%s3037_s2 + $0x28] sm:$0xff]  ;;  %s3045_s5 = smov (!%p216_p4, %s1843_s5), 63 }
   0xd   : > { %593 = vmatpush.bf16.msra.mxu0 %v2306_v0  ;;  %2371 = vmatpush.bf16.msra.mxu2 %v2306_v0  ;;  %v2303_v3 = vld [vmem:[%s3037_s2 + $0x20] sm:$0xff]  ;;  %v2302_v4 = vld [vmem:[%s3037_s2 + $0x18] sm:$0xff]  ;;  %v2301_v5 = vld [vmem:[%s3037_s2 + $0x10] sm:$0xff]  ;;  %s2266_s15 = sshll.u32 %s3045_s5, 4  ;;  %s1847_s13 = sshll.u32 %s3045_s5, 3 }
   0xe   : > { %v2300_v6 = vld [vmem:[%s3037_s2 + $0x8] sm:$0xff]  ;;  %v2299_v7 = vld [vmem:[%s3037_s2] sm:$0xff]  ;;  %v2269_v10 = vld [vmem:[%s3036_s1 + $0x10] sm:$0xff]  ;;  %s2656_s8 = scalar_lea.vmem %s3035_s0, %s2266_s15  ;;  %s2893_s20 = scalar_lea.vmem %s3039_s4, %s1847_s13 }
   0xf   : > { %v2267_v8 = vld [vmem:[%s3036_s1] sm:$0xff]  ;;  %v2268_v9 = vld [vmem:[%s3036_s1 + $0x8] sm:$0xff]  ;;  %v2270_v11 = vld [vmem:[%s3036_s1 + $0x18] sm:$0xff] }
  0x10   : > { %v2271_v12 = vld [vmem:[%s3036_s1 + $0x20] sm:$0xff]  ;;  %v2272_v14 = vld [vmem:[%s3036_s1 + $0x28] sm:$0xff]  ;;  %v2273_v15 = vld [vmem:[%s3036_s1 + $0x30] sm:$0xff] }
  0x11   : > { %594 = vmatpush.bf16.msra.mxu0 %v2305_v1  ;;  %2372 = vmatpush.bf16.msra.mxu2 %v2305_v1  ;;  %v2291_v13 = vld [vmem:[%s3036_s1 + $0xc0] sm:$0xff]  ;;  %v2292_v16 = vld [vmem:[%s3036_s1 + $0xc8] sm:$0xff]  ;;  %v2274_v17 = vld [vmem:[%s3036_s1 + $0x38] sm:$0xff] }
  0x12   : > { %v2293_v18 = vld [vmem:[%s3036_s1 + $0xd0] sm:$0xff]  ;;  %v2275_v19 = vld [vmem:[%s3036_s1 + $0x40] sm:$0xff]  ;;  %v2294_v20 = vld [vmem:[%s3036_s1 + $0xd8] sm:$0xff] }
  0x13   : > { %v2276_v24 = vld [vmem:[%s3036_s1 + $0x48] sm:$0xff]  ;;  %v2295_v25 = vld [vmem:[%s3036_s1 + $0xe0] sm:$0xff]  ;;  %v2277_v29 = vld [vmem:[%s3036_s1 + $0x50] sm:$0xff] }
  0x14   : > { %v2296_v30 = vld [vmem:[%s3036_s1 + $0xe8] sm:$0xff]  ;;  %v2278_v34 = vld [vmem:[%s3036_s1 + $0x58] sm:$0xff]  ;;  %v2297_v35 = vld [vmem:[%s3036_s1 + $0xf0] sm:$0xff] }
  0x15   : > { %595 = vmatpush.bf16.msra.mxu0 %v2304_v2  ;;  %2373 = vmatpush.bf16.msra.mxu2 %v2304_v2  ;;  %v2279_v39 = vld [vmem:[%s3036_s1 + $0x60] sm:$0xff]  ;;  %v2298_v40 = vld [vmem:[%s3036_s1 + $0xf8] sm:$0xff]  ;;  %v2280_v43 = vld [vmem:[%s3036_s1 + $0x68] sm:$0xff] }
  0x16   : > { %v2281_v48 = vld [vmem:[%s3036_s1 + $0x70] sm:$0xff]  ;;  %v2282_v53 = vld [vmem:[%s3036_s1 + $0x78] sm:$0xff]  ;;  %v2283_v60 = vld [vmem:[%s3036_s1 + $0x80] sm:$0xff] }
  0x19   : > { %596 = vmatpush.bf16.msra.mxu0 %v2303_v3  ;;  %2374 = vmatpush.bf16.msra.mxu2 %v2303_v3 }
  0x1d   : > { %597 = vmatpush.bf16.msra.mxu0 %v2302_v4  ;;  %2375 = vmatpush.bf16.msra.mxu2 %v2302_v4  ;;  %v2284_v4 = vld [vmem:[%s3036_s1 + $0x88] sm:$0xff] }
  0x21   : > { %598 = vmatpush.bf16.msra.mxu0 %v2301_v5  ;;  %2376 = vmatpush.bf16.msra.mxu2 %v2301_v5 }
  0x25   : > { %599 = vmatpush.bf16.msra.mxu0 %v2300_v6  ;;  %2377 = vmatpush.bf16.msra.mxu2 %v2300_v6 }
  0x29   : > { %600 = vmatpush.bf16.msra.mxu0 %v2299_v7  ;;  %2378 = vmatpush.bf16.msra.mxu2 %v2299_v7 }
  0x2c   : > { %601 = vmatmul.bf16.vlgmr.msra.gmra.mxu0 %v2267_v8  ;;  %721 = vmatmul.bf16.vlgmr.msra.gmra.mxu2 %v2291_v13 }
  0x3c   : > { %606 = vmatmul.bf16.gmra.mxu0 %v2268_v9  ;;  %726 = vmatmul.bf16.gmra.mxu2 %v2292_v16  ;;  %v2286_v16 = vld [vmem:[%s3036_s1 + $0x98] sm:$0xff] }
  0x4c   : > { %611 = vmatmul.bf16.gmra.mxu0 %v2269_v10  ;;  %731 = vmatmul.bf16.gmra.mxu2 %v2293_v18  ;;  %v2285_v10 = vld [vmem:[%s3036_s1 + $0x90] sm:$0xff] }
  0x5c   : > { %616 = vmatmul.bf16.gmra.mxu0 %v2270_v11  ;;  %736 = vmatmul.bf16.gmra.mxu2 %v2294_v20 }
  0x6c   : > { %621 = vmatmul.bf16.gmra.mxu0 %v2271_v12  ;;  %741 = vmatmul.bf16.gmra.mxu2 %v2295_v25 }
  0x7c   : > { %626 = vmatmul.bf16.gmra.mxu0 %v2272_v14  ;;  %746 = vmatmul.bf16.gmra.mxu2 %v2296_v30 }
  0x8c   : > { %631 = vmatmul.bf16.gmra.mxu0 %v2273_v15  ;;  %751 = vmatmul.bf16.gmra.mxu2 %v2297_v35  ;;  %v2289_v35 = vld [vmem:[%s3036_s1 + $0xb0] sm:$0xff] }
  0x9c   : > { %636 = vmatmul.bf16.gmra.mxu0 %v2274_v17  ;;  %756 = vmatmul.bf16.gmra.mxu2 %v2298_v40 }
  0xa9   : > { %v602_v21 = vpop.f32.mrf.mxu0 }
  0xac   : > { %641 = vmatmul.bf16.gmra.mxu0 %v2275_v19 }
  0xaf   : > { %v2576_v45 = vpop.f32.mrf.mxu2 }
  0xb1   : > { %v604_v22 = vpop.f32.mrf.mxu0 }
  0xb2   : > { %v2545_v23 = vpack.c.bf16 %v604_v22, %v602_v21  ;;  %v2287_v22 = vld [vmem:[%s3036_s1 + $0xa0] sm:$0xff] }
  0xb7   : > { %v2578_v47 = vpop.f32.mrf.mxu2 }
  0xb8   : > { %v786_v40 = vpack.c.bf16 %v2578_v47, %v2576_v45  ;;  %v2010_v47 = vld [vmem:[%s2656_s8] sm:$0xf] }
  0xb9   : > { %v607_v26 = vpop.f32.mrf.mxu0 }
  0xbc   : > { %646 = vmatmul.bf16.gmra.mxu0 %v2276_v24 }
  0xbf   : > { %v2583_v50 = vpop.f32.mrf.mxu2 }
  0xc1   : > { %v609_v27 = vpop.f32.mrf.mxu0 }
  0xc2   : > { %v2553_v28 = vpack.c.bf16 %v609_v27, %v607_v26 }
  0xc7   : > { %v2585_v52 = vpop.f32.mrf.mxu2 }
  0xc9   : > { %v612_v31 = vpop.f32.mrf.mxu0 }
  0xcc   : > { %651 = vmatmul.bf16.gmra.mxu0 %v2277_v29 }
  0xcf   : > { %v2590_v55 = vpop.f32.mrf.mxu2 }
  0xd1   : > { %v614_v32 = vpop.f32.mrf.mxu0 }
  0xd2   : > { %v764_v33 = vpack.c.bf16 %v614_v32, %v612_v31 }
  0xd7   : > { %v2592_v58 = vpop.f32.mrf.mxu2 }
  0xd9   : > { %v617_v36 = vpop.f32.mrf.mxu0 }
  0xdc   : > { %656 = vmatmul.bf16.gmra.mxu0 %v2278_v34 }
  0xdf   : > { %v737_v63 = vpop.f32.mrf.mxu2 }
  0xe1   : > { %v619_v37 = vpop.f32.mrf.mxu0 }
  0xe2   : > { %v765_v38 = vpack.c.bf16 %v619_v37, %v617_v36  ;;  %v788_v37 = vpack.c.bf16 %v2592_v58, %v2590_v55 }
  0xe7   : > { %v739_v3 = vpop.f32.mrf.mxu2 }
  0xe8   : > { %v789_v34 = vpack.c.bf16 %v739_v3, %v737_v63  ;;  %v2170_v3 = vld [vmem:[%s2656_s8 + $0x140] sm:$0xf] }
  0xe9   : > { %v622_v41 = vpop.f32.mrf.mxu0 }
  0xec   : > { %661 = vmatmul.bf16.gmra.mxu0 %v2279_v39 }
  0xef   : > { %v742_v6 = vpop.f32.mrf.mxu2 }
  0xf1   : > { %v624_v42 = vpop.f32.mrf.mxu0 }
  0xf2   : > { %v766_v0 = vpack.c.bf16 %v624_v42, %v622_v41  ;;  %v2290_v41 = vld [vmem:[%s3036_s1 + $0xb8] sm:$0xff] }
  0xf7   : > { %v744_v9 = vpop.f32.mrf.mxu2 }
  0xf9   : > { %v627_v44 = vpop.f32.mrf.mxu0 }
  0xfc   : > { %666 = vmatmul.bf16.gmra.mxu0 %v2280_v43  ;;  %v2138_v43 = vld [vmem:[%s2656_s8 + $0x100] sm:$0xf] }
  0xff   : > { %v747_v12 = vpop.f32.mrf.mxu2 }
 0x101   : > { %v629_v46 = vpop.f32.mrf.mxu0 }
 0x102   : > { %v767_v62 = vpack.c.bf16 %v629_v46, %v627_v44  ;;  %v2341_v44 = vld [vmem:[%s2656_s8 + $0x10c] sm:$0xf0] }
 0x103   : > { %v2139_v45 = vor.u32 %v2341_v44, %v2138_v43  ;;  %v2090_v43 = vld [vmem:[%s2656_s8 + $0xa0] sm:$0xf]  ;;  %v2329_v44 = vld [vmem:[%s2656_s8 + $0xac] sm:$0xf0] }
 0x107   : > { %v749_v15 = vpop.f32.mrf.mxu2 }
 0x108   : > { %v791_v31 = vpack.c.bf16 %v749_v15, %v747_v12  ;;  %v2186_v15 = vld [vmem:[%s2656_s8 + $0x160] sm:$0xf] }
 0x109   : > { %v632_v49 = vpop.f32.mrf.mxu0 }
 0x10c   : > { %671 = vmatmul.bf16.gmra.mxu0 %v2281_v48 }
 0x10f   : > { %v752_v18 = vpop.f32.mrf.mxu2 }
 0x111   : > { %v634_v51 = vpop.f32.mrf.mxu0 }
 0x112   : > { %v768_v59 = vpack.c.bf16 %v634_v51, %v632_v49  ;;  %v2309_v49 = vld [vmem:[%s2656_s8 + $0xc] sm:$0xf0] }
 0x117   : > { %v754_v21 = vpop.f32.mrf.mxu2 }
 0x118   : > { %v792_v30 = vpack.c.bf16 %v754_v21, %v752_v18  ;;  %v2321_v21 = vld [vmem:[%s2656_s8 + $0x6c] sm:$0xf0] }
 0x119   : > { %v637_v54 = vpop.f32.mrf.mxu0 }
 0x11c   : > { %676 = vmatmul.bf16.gmra.mxu0 %v2282_v53  ;;  %v2154_v53 = vld [vmem:[%s2656_s8 + $0x120] sm:$0xf] }
 0x11f   : > { %v757_v24 = vpop.f32.mrf.mxu2 }
 0x121   : > { %v639_v56 = vpop.f32.mrf.mxu0 }
 0x122   : > { %v769_v57 = vpack.c.bf16 %v639_v56, %v637_v54  ;;  %v2345_v54 = vld [vmem:[%s2656_s8 + $0x12c] sm:$0xf0] }
 0x123   : > { %v2155_v56 = vor.u32 %v2345_v54, %v2154_v53 }
 0x124   : > { %1210 = vmatpush.bf16.msra.mxu1 %v769_v57  ;;  %2379 = vmatpush.bf16.msra.mxu3 %v769_v57 }
 0x127   : > { %v759_v26 = vpop.f32.mrf.mxu2 }
 0x128   : > { %1211 = vmatpush.bf16.msra.mxu1 %v768_v59  ;;  %2380 = vmatpush.bf16.msra.mxu3 %v768_v59  ;;  %v793_v27 = vpack.c.bf16 %v759_v26, %v757_v24  ;;  %v2026_v59 = vld [vmem:[%s2656_s8 + $0x20] sm:$0xf] }
 0x129   : > { %v2597_v61 = vpop.f32.mrf.mxu0  ;;  %v2202_v24 = vld [vmem:[%s2656_s8 + $0x180] sm:$0xf] }
 0x12c   : > { %681 = vmatmul.bf16.gmra.mxu0 %v2283_v60  ;;  %1212 = vmatpush.bf16.msra.mxu1 %v767_v62 }
 0x12d   : > { %2381 = vmatpush.bf16.msra.mxu3 %v767_v62  ;;  %v2313_v62 = vld [vmem:[%s2656_s8 + $0x2c] sm:$0xf0] }
 0x12e   : > { %v2027_v63 = vor.u32 %v2313_v62, %v2026_v59  ;;  %v2250_v62 = vld [vmem:[%s2656_s8 + $0x1e0] sm:$0xf] }
 0x130   : > { %1213 = vmatpush.bf16.msra.mxu1 %v766_v0 }
 0x131   : > { %2382 = vmatpush.bf16.msra.mxu3 %v766_v0  ;;  %v2599_v1 = vpop.f32.mrf.mxu0 }
 0x132   : > { %v770_v2 = vpack.c.bf16 %v2599_v1, %v2597_v61  ;;  %v2311_v1 = vld [vmem:[%s2656_s8 + $0x24] sm:$0xf] }
 0x134   : > { %1214 = vmatpush.bf16.msra.mxu1 %v765_v38 }
 0x135   : > { %2383 = vmatpush.bf16.msra.mxu3 %v765_v38  ;;  %v787_v38 = vpack.c.bf16 %v2585_v52, %v2583_v50  ;;  %v2011_v50 = vor.u32 %v2309_v49, %v2010_v47  ;;  %v2234_v47 = vld [vmem:[%s2656_s8 + $0x1c0] sm:$0xf] }
 0x138   : > { %1215 = vmatpush.bf16.msra.mxu1 %v764_v33 }
 0x139   : > { %2384 = vmatpush.bf16.msra.mxu3 %v764_v33  ;;  %v2606_v5 = vpop.f32.mrf.mxu0  ;;  %v790_v33 = vpack.c.bf16 %v744_v9, %v742_v6  ;;  %v2307_v9 = vld [vmem:[%s2656_s8 + $0x4] sm:$0xf] }
 0x13c   : > { %686 = vmatmul.bf16.gmra.mxu0 %v2284_v4  ;;  %1216 = vmatpush.bf16.msra.mxu1 %v2553_v28  ;;  %v2349_v4 = vld [vmem:[%s2656_s8 + $0x14c] sm:$0xf0] }
 0x13d   : > { %2385 = vmatpush.bf16.msra.mxu3 %v2553_v28  ;;  %v2288_v28 = vld [vmem:[%s3036_s1 + $0xa8] sm:$0xff]  ;;  %v2171_v6 = vor.u32 %v2349_v4, %v2170_v3  ;;  %v2327_v4 = vld [vmem:[%s2656_s8 + $0xa4] sm:$0xf] }
 0x140   : > { %1217 = vmatpush.bf16.msra.mxu1 %v2545_v23 }
 0x141   : > { %2386 = vmatpush.bf16.msra.mxu3 %v2545_v23  ;;  %v2612_v7 = vpop.f32.mrf.mxu0 }
 0x142   : > { %v771_v8 = vpack.c.bf16 %v2612_v7, %v2606_v5  ;;  %v2317_v5 = vld [vmem:[%s2656_s8 + $0x4c] sm:$0xf0] }
 0x143   : > { %1218 = vmatmul.bf16.vlgmr.msra.gmra.mxu1 %v2011_v50  ;;  %v2323_v50 = vld [vmem:[%s2656_s8 + $0x84] sm:$0xf] }
 0x144   : > { %1477 = vmatpush.bf16.msrb.mxu1 %v793_v27  ;;  %1258 = vmatmul.bf16.vlgmr.msra.gmra.mxu3 %v2139_v45  ;;  %v2315_v27 = vld [vmem:[%s2656_s8 + $0x44] sm:$0xf]  ;;  %v2091_v45 = vor.u32 %v2329_v44, %v2090_v43  ;;  %v2310_v43 = vld [vmem:[%s2656_s8 + $0x14] sm:$0xf0] }
 0x148   : > { %1478 = vmatpush.bf16.msrb.mxu1 %v792_v30 }
 0x149   : > { %v2619_v11 = vpop.f32.mrf.mxu0 }
 0x14c   : > { %691 = vmatmul.bf16.gmra.mxu0 %v2285_v10  ;;  %1479 = vmatpush.bf16.msrb.mxu1 %v791_v31  ;;  %v2012_v10 = vld [vmem:[%s2656_s8 + $0x10] sm:$0xf0]  ;;  %v2074_v31 = vld [vmem:[%s2656_s8 + $0x80] sm:$0xf] }
 0x14d   : > { %v2015_v12 = vor.u32 %v2307_v9, %v2012_v10 }
 0x150   : > { %1480 = vmatpush.bf16.msrb.mxu1 %v790_v33  ;;  %v2325_v33 = vld [vmem:[%s2656_s8 + $0x8c] sm:$0xf0] }
 0x151   : > { %v2621_v13 = vpop.f32.mrf.mxu0 }
 0x152   : > { %v772_v14 = vpack.c.bf16 %v2621_v13, %v2619_v11  ;;  %v2042_v13 = vld [vmem:[%s2656_s8 + $0x40] sm:$0xf] }
 0x153   : > { %1223 = vmatmul.bf16.gmra.mxu1 %v2027_v63  ;;  %v2043_v7 = vor.u32 %v2317_v5, %v2042_v13  ;;  %v2369_v63 = vld [vmem:[%s2656_s8 + $0x1ec] sm:$0xf0] }
 0x154   : > { %1481 = vmatpush.bf16.msrb.mxu1 %v789_v34  ;;  %1263 = vmatmul.bf16.gmra.mxu3 %v2155_v56  ;;  %v2075_v34 = vor.u32 %v2325_v33, %v2074_v31  ;;  %v2333_v56 = vld [vmem:[%s2656_s8 + $0xcc] sm:$0xf0]  ;;  %v2251_v3 = vor.u32 %v2369_v63, %v2250_v62 }
 0x155   : > { %v2337_v13 = vld [vmem:[%s2656_s8 + $0xec] sm:$0xf0] }
 0x158   : > { %1482 = vmatpush.bf16.msrb.mxu1 %v788_v37  ;;  %v2361_v37 = vld [vmem:[%s2656_s8 + $0x1ac] sm:$0xf0] }
 0x159   : > { %v2628_v17 = vpop.f32.mrf.mxu0 }
 0x15c   : > { %696 = vmatmul.bf16.gmra.mxu0 %v2286_v16  ;;  %1483 = vmatpush.bf16.msrb.mxu1 %v787_v38  ;;  %v2353_v16 = vld [vmem:[%s2656_s8 + $0x16c] sm:$0xf0] }
 0x15d   : > { %v2187_v61 = vor.u32 %v2353_v16, %v2186_v15  ;;  %v2331_v15 = vld [vmem:[%s2656_s8 + $0xc4] sm:$0xf]  ;;  %v2108_v16 = vld [vmem:[%s2656_s8 + $0xd0] sm:$0xf0] }
 0x160   : > { %1484 = vmatpush.bf16.msrb.mxu1 %v786_v40  ;;  %v2060_v40 = vld [vmem:[%s2656_s8 + $0x70] sm:$0xf0] }
 0x161   : > { %v2630_v19 = vpop.f32.mrf.mxu0 }
 0x162   : > { %v773_v20 = vpack.c.bf16 %v2630_v19, %v2628_v17  ;;  %v2058_v19 = vld [vmem:[%s2656_s8 + $0x60] sm:$0xf] }
 0x163   : > { %1228 = vmatmul.bf16.gmra.mxu1 %v2043_v7 }
 0x164   : > { %1268 = vmatmul.bf16.gmra.mxu3 %v2171_v6  ;;  %v2092_v6 = vld [vmem:[%s2656_s8 + $0xb0] sm:$0xf0] }
 0x165   : > { %v2095_v9 = vor.u32 %v2327_v4, %v2092_v6  ;;  %v2172_v4 = vld [vmem:[%s2656_s8 + $0x150] sm:$0xf0]  ;;  %v2050_v6 = vld [vmem:[%s2656_s8 + $0x48] sm:$0xf] }
 0x169   : > { %v662_v23 = vpop.f32.mrf.mxu0 }
 0x16c   : > { %701 = vmatmul.bf16.gmra.mxu0 %v2287_v22  ;;  %v2059_v22 = vor.u32 %v2321_v21, %v2058_v19  ;;  %v2020_v21 = vld [vmem:[%s2656_s8 + $0x18] sm:$0xf0] }
 0x171   : > { %v664_v25 = vpop.f32.mrf.mxu0 }
 0x172   : > { %v774_v57 = vpack.c.bf16 %v664_v25, %v662_v23  ;;  %v2357_v25 = vld [vmem:[%s2656_s8 + $0x18c] sm:$0xf0] }
 0x173   : > { %1233 = vmatmul.bf16.gmra.mxu1 %v2059_v22  ;;  %v2203_v26 = vor.u32 %v2357_v25, %v2202_v24 }
 0x174   : > { %1273 = vmatmul.bf16.gmra.mxu3 %v2187_v61  ;;  %v2111_v61 = vor.u32 %v2331_v15, %v2108_v16  ;;  %v2084_v16 = vld [vmem:[%s2656_s8 + $0x98] sm:$0xf0] }
 0x179   : > { %v667_v29 = vpop.f32.mrf.mxu0 }
 0x17c   : > { %706 = vmatmul.bf16.gmra.mxu0 %v2288_v28  ;;  %v2044_v28 = vld [vmem:[%s2656_s8 + $0x50] sm:$0xf0] }
 0x181   : > { %v669_v32 = vpop.f32.mrf.mxu0 }
 0x182   : > { %v775_v55 = vpack.c.bf16 %v669_v32, %v667_v29  ;;  %v2047_v29 = vor.u32 %v2315_v27, %v2044_v28  ;;  %v2335_v28 = vld [vmem:[%s2656_s8 + $0xe4] sm:$0xf] }
 0x183   : > { %1238 = vmatmul.bf16.gmra.mxu1 %v2075_v34  ;;  %v2312_v34 = vld [vmem:[%s2656_s8 + $0x2c] sm:$0xf] }
 0x184   : > { %1278 = vmatmul.bf16.gmra.mxu3 %v2203_v26 }
 0x189   : > { %v672_v36 = vpop.f32.mrf.mxu0 }
 0x18c   : > { %711 = vmatmul.bf16.gmra.mxu0 %v2289_v35 }
 0x191   : > { %v674_v39 = vpop.f32.mrf.mxu0 }
 0x192   : > { %v776_v51 = vpack.c.bf16 %v674_v39, %v672_v36  ;;  %v2218_v36 = vld [vmem:[%s2656_s8 + $0x1a0] sm:$0xf]  ;;  %v2319_v39 = vld [vmem:[%s2656_s8 + $0x64] sm:$0xf] }
 0x193   : > { %v2219_v38 = vor.u32 %v2361_v37, %v2218_v36  ;;  %1243 = vmatmul.bf16.gmra.mxu1 %v2091_v45 }
 0x195   : > { %1283 = vmatmul.bf16.gmra.mxu3 %v2219_v38  ;;  %v2036_v38 = vld [vmem:[%s2656_s8 + $0x38] sm:$0xf0] }
 0x199   : > { %v677_v42 = vpop.f32.mrf.mxu0 }
 0x19c   : > { %716 = vmatmul.bf16.gmra.mxu0 %v2290_v41  ;;  %v2063_v41 = vor.u32 %v2319_v39, %v2060_v40  ;;  %v2039_v39 = vor.u32 %v2312_v34, %v2036_v38  ;;  %v2339_v40 = vld [vmem:[%s2656_s8 + $0x104] sm:$0xf]  ;;  %v2328_v34 = vld [vmem:[%s2656_s8 + $0xac] sm:$0xf]  ;;  %v2100_v38 = vld [vmem:[%s2656_s8 + $0xb8] sm:$0xf0] }
 0x1a1   : > { %v679_v46 = vpop.f32.mrf.mxu0 }
 0x1a2   : > { %v777_v48 = vpack.c.bf16 %v679_v46, %v677_v42 }
 0x1a4   : > { %1299 = vmatpush.bf16.msrb.mxu2 %v777_v48  ;;  %v2365_v48 = vld [vmem:[%s2656_s8 + $0x1cc] sm:$0xf0] }
 0x1a5   : > { %v2235_v49 = vor.u32 %v2365_v48, %v2234_v47  ;;  %v2156_v47 = vld [vmem:[%s2656_s8 + $0x130] sm:$0xf0] }
 0x1a7   : > { %1288 = vmatmul.bf16.gmra.mxu3 %v2235_v49 }
 0x1a8   : > { %1300 = vmatpush.bf16.msrb.mxu2 %v776_v51  ;;  %v2076_v51 = vld [vmem:[%s2656_s8 + $0x90] sm:$0xf0] }
 0x1a9   : > { %v2665_v52 = vpop.f32.mrf.mxu0  ;;  %v2079_v53 = vor.u32 %v2323_v50, %v2076_v51 }
 0x1ac   : > { %1301 = vmatpush.bf16.msrb.mxu2 %v775_v55  ;;  %v2106_v55 = vld [vmem:[%s2656_s8 + $0xc0] sm:$0xf] }
 0x1b0   : > { %1302 = vmatpush.bf16.msrb.mxu2 %v774_v57  ;;  %v2107_v57 = vor.u32 %v2333_v56, %v2106_v55  ;;  %v2068_v55 = vld [vmem:[%s2656_s8 + $0x78] sm:$0xf0] }
 0x1b1   : > { %v2669_v58 = vpop.f32.mrf.mxu0 }
 0x1b2   : > { %v778_v60 = vpack.c.bf16 %v2669_v58, %v2665_v52  ;;  %1248 = vmatmul.bf16.gmra.mxu1 %v2107_v57  ;;  %v2034_v52 = vld [vmem:[%s2656_s8 + $0x28] sm:$0xf]  ;;  %v2314_v58 = vld [vmem:[%s2656_s8 + $0x34] sm:$0xf0] }
 0x1b3   : > { %v2035_v50 = vor.u32 %v2314_v58, %v2034_v52  ;;  %v2116_v52 = vld [vmem:[%s2656_s8 + $0xd8] sm:$0xf0] }
 0x1b4   : > { %1303 = vmatpush.bf16.msrb.mxu2 %v773_v20 }
 0x1b7   : > { %1293 = vmatmul.bf16.gmra.mxu3 %v2251_v3  ;;  %v2347_v3 = vld [vmem:[%s2656_s8 + $0x144] sm:$0xf] }
 0x1b8   : > { %1304 = vmatpush.bf16.msrb.mxu2 %v772_v14 }
 0x1b9   : > { %v2681_v0 = vpop.f32.mrf.mxu0 }
 0x1bc   : > { %1305 = vmatpush.bf16.msrb.mxu2 %v771_v8 }
 0x1c0   : > { %1306 = vmatpush.bf16.msrb.mxu2 %v770_v2  ;;  %v2028_v2 = vld [vmem:[%s2656_s8 + $0x30] sm:$0xf0]  ;;  %v1219_v19 = vpop.f32.mrf.mxu1 }
 0x1c1   : > { %v2693_v11 = vpop.f32.mrf.mxu0  ;;  %v2031_v17 = vor.u32 %v2311_v1, %v2028_v2  ;;  %v2308_v2 = vld [vmem:[%s2656_s8 + $0xc] sm:$0xf] }
 0x1c2   : > { %v779_v14 = vpack.c.bf16 %v2693_v11, %v2681_v0  ;;  %v2023_v22 = vor.u32 %v2308_v2, %v2020_v21  ;;  %v2351_v21 = vld [vmem:[%s2656_s8 + $0x164] sm:$0xf] }
 0x1c3   : > { %1307 = vmatmul.bf16.vlgmr.msrb.gmra.mxu2 %v2015_v12  ;;  %v2122_v12 = vld [vmem:[%s2656_s8 + $0xe0] sm:$0xf] }
 0x1c4   : > { %v2123_v5 = vor.u32 %v2337_v13, %v2122_v12  ;;  %v2175_v13 = vor.u32 %v2347_v3, %v2172_v4  ;;  %v2132_v4 = vld [vmem:[%s2656_s8 + $0xf8] sm:$0xf0] }
 0x1c6   : > { %1253 = vmatmul.bf16.gmra.mxu1 %v2123_v5 }
 0x1c7   : > { %v2747_v25 = vpop.f32.mrf.mxu3 }
 0x1c8   : > { %v1221_v27 = vpop.f32.mrf.mxu1 }
 0x1c9   : > { %v2699_v8 = vpop.f32.mrf.mxu0 }
 0x1cf   : > { %v2753_v36 = vpop.f32.mrf.mxu3 }
 0x1d0   : > { %v1224_v37 = vpop.f32.mrf.mxu1 }
 0x1d1   : > { %v2705_v18 = vpop.f32.mrf.mxu0 }
 0x1d2   : > { %v780_v20 = vpack.c.bf16 %v2705_v18, %v2699_v8  ;;  %v2316_v8 = vld [vmem:[%s2656_s8 + $0x4c] sm:$0xf] }
 0x1d3   : > { %1312 = vmatmul.bf16.gmra.mxu2 %v2031_v17 }
 0x1d6   : > { %1485 = vmatmul.bf16.vlgmr.msrb.gmra.mxu1 %v2023_v22  ;;  %v2188_v22 = vld [vmem:[%s2656_s8 + $0x170] sm:$0xf0] }
 0x1d7   : > { %v2769_v44 = vpop.f32.mrf.mxu3 }
 0x1d9   : > { %v2711_v23 = vpop.f32.mrf.mxu0 }
 0x1e1   : > { %v2717_v30 = vpop.f32.mrf.mxu0 }
 0x1e2   : > { %v781_v32 = vpack.c.bf16 %v2717_v30, %v2711_v23 }
 0x1e3   : > { %1317 = vmatmul.bf16.gmra.mxu2 %v2047_v29  ;;  %v2124_v29 = vld [vmem:[%s2656_s8 + $0xf0] sm:$0xf0] }
 0x1e4   : > { %v2127_v33 = vor.u32 %v2335_v28, %v2124_v29 }
 0x1e6   : > { %1490 = vmatmul.bf16.gmra.mxu1 %v2039_v39  ;;  %v2103_v39 = vor.u32 %v2328_v34, %v2100_v38  ;;  %v2367_v34 = vld [vmem:[%s2656_s8 + $0x1e4] sm:$0xf]  ;;  %v2252_v38 = vld [vmem:[%s2656_s8 + $0x1f0] sm:$0xf0] }
 0x1e9   : > { %v2723_v35 = vpop.f32.mrf.mxu0 }
 0x1f1   : > { %v704_v42 = vpop.f32.mrf.mxu0 }
 0x1f2   : > { %v782_v31 = vpack.c.bf16 %v704_v42, %v2723_v35  ;;  %v1226_v35 = vpop.f32.mrf.mxu1  ;;  %v2018_v42 = vld [vmem:[%s2656_s8 + $0x8] sm:$0xf] }
 0x1f3   : > { %1322 = vmatmul.bf16.gmra.mxu2 %v2063_v41  ;;  %v2140_v41 = vld [vmem:[%s2656_s8 + $0x110] sm:$0xf0]  ;;  %v2019_v30 = vor.u32 %v2310_v43, %v2018_v42  ;;  %v2355_v43 = vld [vmem:[%s2656_s8 + $0x184] sm:$0xf] }
 0x1f4   : > { %v2143_v23 = vor.u32 %v2339_v40, %v2140_v41 }
 0x1f9   : > { %v707_v46 = vpop.f32.mrf.mxu0 }
 0x1fa   : > { %v1229_v18 = vpop.f32.mrf.mxu1 }
 0x201   : > { %v709_v54 = vpop.f32.mrf.mxu0 }
 0x202   : > { %v783_v26 = vpack.c.bf16 %v709_v54, %v707_v46  ;;  %v1231_v45 = vpop.f32.mrf.mxu1  ;;  %v2343_v46 = vld [vmem:[%s2656_s8 + $0x124] sm:$0xf] }
 0x203   : > { %1327 = vmatmul.bf16.gmra.mxu2 %v2079_v53  ;;  %v2159_v49 = vor.u32 %v2343_v46, %v2156_v47  ;;  %v2320_v53 = vld [vmem:[%s2656_s8 + $0x6c] sm:$0xf] }
 0x204   : > { %v2071_v56 = vor.u32 %v2320_v53, %v2068_v55  ;;  %v2098_v53 = vld [vmem:[%s2656_s8 + $0xa8] sm:$0xf] }
 0x209   : > { %v712_v59 = vpop.f32.mrf.mxu0 }
 0x20a   : > { %v1234_v54 = vpop.f32.mrf.mxu1 }
 0x211   : > { %v714_v10 = vpop.f32.mrf.mxu0 }
 0x212   : > { %v784_v24 = vpack.c.bf16 %v714_v10, %v712_v59  ;;  %v1236_v63 = vpop.f32.mrf.mxu1 }
 0x213   : > { %1332 = vmatmul.bf16.gmra.mxu2 %v2095_v9  ;;  %v2318_v9 = vld [vmem:[%s2656_s8 + $0x54] sm:$0xf0] }
 0x214   : > { %v2051_v5 = vor.u32 %v2318_v9, %v2050_v6 }
 0x219   : > { %v717_v7 = vpop.f32.mrf.mxu0 }
 0x21a   : > { %v2801_v15 = vpop.f32.mrf.mxu1 }
 0x221   : > { %v719_v1 = vpop.f32.mrf.mxu0 }
 0x222   : > { %v785_v17 = vpack.c.bf16 %v719_v1, %v717_v7  ;;  %v2324_v7 = vld [vmem:[%s2656_s8 + $0x8c] sm:$0xf] }
 0x223   : > { %1337 = vmatmul.bf16.gmra.mxu2 %v2111_v61  ;;  %v2087_v61 = vor.u32 %v2324_v7, %v2084_v16  ;;  %v2114_v7 = vld [vmem:[%s2656_s8 + $0xc8] sm:$0xf]  ;;  %v2334_v16 = vld [vmem:[%s2656_s8 + $0xd4] sm:$0xf0] }
 0x224   : > { %1388 = vmatpush.bf16.msrb.mxu3 %v785_v17 }
 0x228   : > { %1389 = vmatpush.bf16.msrb.mxu3 %v784_v24  ;;  %v2066_v24 = vld [vmem:[%s2656_s8 + $0x68] sm:$0xf] }
 0x22c   : > { %1390 = vmatpush.bf16.msrb.mxu3 %v783_v26  ;;  %v2322_v26 = vld [vmem:[%s2656_s8 + $0x74] sm:$0xf0] }
 0x230   : > { %1391 = vmatpush.bf16.msrb.mxu3 %v782_v31  ;;  %v2191_v31 = vor.u32 %v2351_v21, %v2188_v22  ;;  %v2340_v22 = vld [vmem:[%s2656_s8 + $0x10c] sm:$0xf] }
 0x233   : > { %1342 = vmatmul.bf16.gmra.mxu2 %v2127_v33  ;;  %v2067_v33 = vor.u32 %v2322_v26, %v2066_v24  ;;  %v2148_v24 = vld [vmem:[%s2656_s8 + $0x118] sm:$0xf0] }
 0x234   : > { %1392 = vmatpush.bf16.msrb.mxu3 %v781_v32 }
 0x238   : > { %1393 = vmatpush.bf16.msrb.mxu3 %v780_v20  ;;  %v2052_v20 = vld [vmem:[%s2656_s8 + $0x58] sm:$0xf0] }
 0x239   : > { %v2055_v0 = vor.u32 %v2316_v8, %v2052_v20  ;;  %v2326_v8 = vld [vmem:[%s2656_s8 + $0x94] sm:$0xf0] }
 0x23b   : > { %1495 = vmatmul.bf16.gmra.mxu1 %v2055_v0 }
 0x23c   : > { %1394 = vmatpush.bf16.msrb.mxu3 %v779_v14  ;;  %v2776_v14 = vpop.f32.mrf.mxu3 }
 0x240   : > { %1395 = vmatpush.bf16.msrb.mxu3 %v778_v60 }
 0x243   : > { %1347 = vmatmul.bf16.gmra.mxu2 %v2143_v23  ;;  %1396 = vmatmul.bf16.vlgmr.msrb.gmra.mxu3 %v2019_v30  ;;  %v2204_v23 = vld [vmem:[%s2656_s8 + $0x190] sm:$0xf0]  ;;  %v2082_v30 = vld [vmem:[%s2656_s8 + $0x88] sm:$0xf] }
 0x244   : > { %v2786_v51 = vpop.f32.mrf.mxu3  ;;  %v2207_v0 = vor.u32 %v2355_v43, %v2204_v23  ;;  %v2255_v43 = vor.u32 %v2367_v34, %v2252_v38  ;;  %v2196_v38 = vld [vmem:[%s2656_s8 + $0x178] sm:$0xf0] }
 0x246   : > { %v1308_v11 = vpop.f32.mrf.mxu2 }
 0x247   : > { %v2778_v32 = vadd.f32 %v1308_v11, %v1219_v19  ;;  %v2808_v19 = vpop.f32.mrf.mxu1  ;;  %v2083_v11 = vor.u32 %v2326_v8, %v2082_v30  ;;  %v2344_v30 = vld [vmem:[%s2656_s8 + $0x12c] sm:$0xf] }
 0x24b   : > { %1500 = vmatmul.bf16.gmra.mxu1 %v2071_v56 }
 0x24c   : > { %v2792_v62 = vpop.f32.mrf.mxu3 }
 0x24e   : > { %v1310_v60 = vpop.f32.mrf.mxu2 }
 0x24f   : > { %v2784_v48 = vadd.f32 %v1310_v60, %v1221_v27 }
 0x253   : > { %1352 = vmatmul.bf16.gmra.mxu2 %v2159_v49  ;;  %1401 = vmatmul.bf16.gmra.mxu3 %v2035_v50  ;;  %v2359_v49 = vld [vmem:[%s2656_s8 + $0x1a4] sm:$0xf]  ;;  %v2220_v50 = vld [vmem:[%s2656_s8 + $0x1b0] sm:$0xf0] }
 0x254   : > { %v2804_v1 = vpop.f32.mrf.mxu3  ;;  %v2223_v56 = vor.u32 %v2359_v49, %v2220_v50 }
 0x256   : > { %v1313_v57 = vpop.f32.mrf.mxu2 }
 0x257   : > { %v2790_v59 = vadd.f32 %v1313_v57, %v1224_v37  ;;  %v2819_v37 = vpop.f32.mrf.mxu1 }
 0x25b   : > { %1505 = vmatmul.bf16.gmra.mxu1 %v2087_v61 }
 0x25c   : > { %v2814_v28 = vpop.f32.mrf.mxu3 }
 0x25e   : > { %v1315_v10 = vpop.f32.mrf.mxu2 }
 0x25f   : > { %v2798_v12 = vadd.f32 %v1315_v10, %v1226_v35  ;;  %v2826_v42 = vpop.f32.mrf.mxu1 }
 0x263   : > { %1357 = vmatmul.bf16.gmra.mxu2 %v2175_v13  ;;  %1406 = vmatmul.bf16.gmra.mxu3 %v2051_v5  ;;  %v2363_v13 = vld [vmem:[%s2656_s8 + $0x1c4] sm:$0xf]  ;;  %v2236_v5 = vld [vmem:[%s2656_s8 + $0x1d0] sm:$0xf0] }
 0x264   : > { %v2824_v41 = vpop.f32.mrf.mxu3  ;;  %v2239_v61 = vor.u32 %v2363_v13, %v2236_v5  ;;  %v2884_v13 = vld [vmem:[%s3038_s3] ss:$0 sm:$0xff] }
 0x266   : > { %v1318_v2 = vpop.f32.mrf.mxu2 }
 0x267   : > { %v2806_v17 = vadd.f32 %v1318_v2, %v1229_v18  ;;  %v2837_v47 = vpop.f32.mrf.mxu1  ;;  %v2115_v2 = vor.u32 %v2334_v16, %v2114_v7  ;;  %v2162_v7 = vld [vmem:[%s2656_s8 + $0x128] sm:$0xf]  ;;  %v2346_v16 = vld [vmem:[%s2656_s8 + $0x134] sm:$0xf0] }
 0x26b   : > { %1510 = vmatmul.bf16.gmra.mxu1 %v2103_v39  ;;  %v2130_v39 = vld [vmem:[%s2656_s8 + $0xe8] sm:$0xf] }
 0x26c   : > { %v2835_v46 = vpop.f32.mrf.mxu3 }
 0x26e   : > { %v1320_v27 = vpop.f32.mrf.mxu2 }
 0x26f   : > { %v2816_v29 = vadd.f32 %v1320_v27, %v1231_v45  ;;  %v2332_v45 = vld [vmem:[%s2656_s8 + $0xcc] sm:$0xf]  ;;  %v2840_v60 = vpop.f32.mrf.mxu1  ;;  %v2151_v27 = vor.u32 %v2340_v22, %v2148_v24  ;;  %v2163_v24 = vor.u32 %v2346_v16, %v2162_v7 }
 0x270   : > { %v2119_v58 = vor.u32 %v2332_v45, %v2116_v52  ;;  %v2146_v52 = vld [vmem:[%s2656_s8 + $0x108] sm:$0xf] }
 0x273   : > { %1362 = vmatmul.bf16.gmra.mxu2 %v2191_v31  ;;  %1411 = vmatmul.bf16.gmra.mxu3 %v2067_v33 }
 0x274   : > { %v2846_v55 = vpop.f32.mrf.mxu3 }
 0x276   : > { %v1323_v35 = vpop.f32.mrf.mxu2 }
 0x277   : > { %v2822_v40 = vadd.f32 %v1323_v35, %v1234_v54  ;;  %v2330_v54 = vld [vmem:[%s2656_s8 + $0xb4] sm:$0xf0]  ;;  %v2849_v3 = vpop.f32.mrf.mxu1 }
 0x278   : > { %v2099_v57 = vor.u32 %v2330_v54, %v2098_v53  ;;  %v2338_v35 = vld [vmem:[%s2656_s8 + $0xf4] sm:$0xf0]  ;;  %v2348_v53 = vld [vmem:[%s2656_s8 + $0x14c] sm:$0xf] }
 0x279   : > { %v2131_v23 = vor.u32 %v2338_v35, %v2130_v39 }
 0x27b   : > { %1515 = vmatmul.bf16.gmra.mxu1 %v2119_v58  ;;  %v2342_v58 = vld [vmem:[%s2656_s8 + $0x114] sm:$0xf0] }
 0x27c   : > { %v2852_v9 = vpop.f32.mrf.mxu3  ;;  %v2147_v50 = vor.u32 %v2342_v58, %v2146_v52  ;;  %v2350_v52 = vld [vmem:[%s2656_s8 + $0x154] sm:$0xf0] }
 0x27e   : > { %v1325_v18 = vpop.f32.mrf.mxu2 }
 0x27f   : > { %v2832_v20 = vadd.f32 %v1325_v18, %v1236_v63  ;;  %v2336_v63 = vld [vmem:[%s2656_s8 + $0xec] sm:$0xf]  ;;  %v2854_v10 = vpop.f32.mrf.mxu1  ;;  %v2164_v18 = vld [vmem:[%s2656_s8 + $0x138] sm:$0xf0] }
 0x280   : > { %v2135_v6 = vor.u32 %v2336_v63, %v2132_v4 }
 0x283   : > { %1367 = vmatmul.bf16.gmra.mxu2 %v2207_v0  ;;  %1416 = vmatmul.bf16.gmra.mxu3 %v2083_v11  ;;  %v2167_v0 = vor.u32 %v2344_v30, %v2164_v18 }
 0x284   : > { %v2860_v21 = vpop.f32.mrf.mxu3 }
 0x286   : > { %v2899_v35 = vpop.f32.mrf.mxu2 }
 0x287   : > { %v1486_v26 = vpop.f32.mrf.mxu1 }
 0x28b   : > { %1520 = vmatmul.bf16.gmra.mxu1 %v2135_v6 }
 0x28c   : > { %v2864_v31 = vpop.f32.mrf.mxu3 }
 0x28f   : > { %v1488_v33 = vpop.f32.mrf.mxu1 }
 0x293   : > { %1372 = vmatmul.bf16.gmra.mxu2 %v2223_v56  ;;  %1421 = vmatmul.bf16.gmra.mxu3 %v2099_v57  ;;  %v2180_v56 = vld [vmem:[%s2656_s8 + $0x158] sm:$0xf0] }
 0x294   : > { %v2872_v11 = vpop.f32.mrf.mxu3  ;;  %v2183_v57 = vor.u32 %v2348_v53, %v2180_v56 }
 0x297   : > { %v1491_v8 = vpop.f32.mrf.mxu1 }
 0x29b   : > { %1525 = vmatmul.bf16.gmra.mxu1 %v2151_v27  ;;  %v2352_v27 = vld [vmem:[%s2656_s8 + $0x16c] sm:$0xf] }
 0x29c   : > { %v2876_v49 = vpop.f32.mrf.mxu3  ;;  %v2199_v39 = vor.u32 %v2352_v27, %v2196_v38 }
 0x29f   : > { %v1493_v45 = vpop.f32.mrf.mxu1 }
 0x2a3   : > { %1377 = vmatmul.bf16.gmra.mxu2 %v2239_v61  ;;  %1426 = vmatmul.bf16.gmra.mxu3 %v2115_v2 }
 0x2ab   : > { %1530 = vmatmul.bf16.gmra.mxu1 %v2167_v0  ;;  %v2178_v0 = vld [vmem:[%s2656_s8 + $0x148] sm:$0xf] }
 0x2b3   : > { %1382 = vmatmul.bf16.gmra.mxu2 %v2255_v43  ;;  %1431 = vmatmul.bf16.gmra.mxu3 %v2131_v23 }
 0x2b8   : > { %v1496_v54 = vpop.f32.mrf.mxu1 }
 0x2bb   : > { %1535 = vmatmul.bf16.gmra.mxu1 %v2183_v57 }
 0x2c0   : > { %v1498_v5 = vpop.f32.mrf.mxu1 }
 0x2c3   : > { %1436 = vmatmul.bf16.gmra.mxu3 %v2147_v50  ;;  %v2907_v50 = vpop.f32.mrf.mxu2 }
 0x2c6   : > { %v1397_v63 = vpop.f32.mrf.mxu3 }
 0x2c7   : > { %v1398_v4 = vadd.f32 %v1397_v63, %v2778_v32  ;;  %v2179_v63 = vor.u32 %v2350_v52, %v2178_v0 }
 0x2c8   : > { %v1501_v34 = vpop.f32.mrf.mxu1 }
 0x2c9   : > { %v1487_v6 = vadd.f32 %v1486_v26, %v1398_v4 }
 0x2cb   : > { %v1669_v61 = vadd.f32 %v2884_v13, %v1487_v6  ;;  %1540 = vmatmul.bf16.gmra.mxu1 %v2199_v39  ;;  %v2356_v6 = vld [vmem:[%s2656_s8 + $0x18c] sm:$0xf] }
 0x2cd   : > { %v1701_v2 = vmax.f32 %v1669_v61, 0.0 }
 0x2ce   : > { %v1399_v32 = vpop.f32.mrf.mxu3 }
 0x2cf   : > { %v1400_v22 = vadd.f32 %v1399_v32, %v2784_v48  ;;  %1733 = vst [vmem:[%s2893_s20] sm:$0xff] %v1701_v2 }
 0x2d0   : > { %v1503_v18 = vpop.f32.mrf.mxu1 }
 0x2d1   : > { %v1489_v26 = vadd.f32 %v1488_v33, %v1400_v22 }
 0x2d3   : > { %1441 = vmatmul.bf16.gmra.mxu3 %v2163_v24  ;;  %v1670_v43 = vadd.f32 %v2884_v13, %v1489_v26  ;;  %v2194_v24 = vld [vmem:[%s2656_s8 + $0x168] sm:$0xf]  ;;  %v2354_v26 = vld [vmem:[%s2656_s8 + $0x174] sm:$0xf0] }
 0x2d5   : > { %v1702_v30 = vmax.f32 %v1670_v43, 0.0 }
 0x2d6   : > { %v1402_v23 = vpop.f32.mrf.mxu3 }
 0x2d7   : > { %v1403_v48 = vadd.f32 %v1402_v23, %v2790_v59  ;;  %1734 = vst [vmem:[%s2893_s20 + $0x8] sm:$0xff] %v1702_v30  ;;  %v2195_v23 = vor.u32 %v2354_v26, %v2194_v24  ;;  %v1329_v24 = vadd.f32 %v2899_v35, %v2801_v15 }
 0x2d8   : > { %v1506_v59 = vpop.f32.mrf.mxu1 }
 0x2d9   : > { %v1492_v33 = vadd.f32 %v1491_v8, %v1403_v48  ;;  %v2212_v8 = vld [vmem:[%s2656_s8 + $0x198] sm:$0xf0] }
 0x2da   : > { %v2215_v7 = vor.u32 %v2356_v6, %v2212_v8 }
 0x2db   : > { %v1671_v58 = vadd.f32 %v2884_v13, %v1492_v33  ;;  %v2360_v33 = vld [vmem:[%s2656_s8 + $0x1ac] sm:$0xf] }
 0x2dc   : > { %1545 = vmatmul.bf16.gmra.mxu1 %v2215_v7 }
 0x2dd   : > { %v1703_v56 = vmax.f32 %v1671_v58, 0.0 }
 0x2de   : > { %v1404_v53 = vpop.f32.mrf.mxu3 }
 0x2df   : > { %v1405_v57 = vadd.f32 %v1404_v53, %v2798_v12  ;;  %1735 = vst [vmem:[%s2893_s20 + $0x10] sm:$0xff] %v1703_v56  ;;  %v2915_v12 = vpop.f32.mrf.mxu2 }
 0x2e0   : > { %v1508_v22 = vpop.f32.mrf.mxu1 }
 0x2e1   : > { %v1494_v4 = vadd.f32 %v1493_v45, %v1405_v57 }
 0x2e3   : > { %1446 = vmatmul.bf16.gmra.mxu3 %v2179_v63  ;;  %v1672_v16 = vadd.f32 %v2884_v13, %v1494_v4  ;;  %v2210_v63 = vld [vmem:[%s2656_s8 + $0x188] sm:$0xf]  ;;  %v2358_v4 = vld [vmem:[%s2656_s8 + $0x194] sm:$0xf0] }
 0x2e5   : > { %v1704_v32 = vmax.f32 %v1672_v16, 0.0 }
 0x2e6   : > { %v1407_v61 = vpop.f32.mrf.mxu3 }
 0x2e7   : > { %v1408_v2 = vadd.f32 %v1407_v61, %v2806_v17  ;;  %1736 = vst [vmem:[%s2893_s20 + $0x18] sm:$0xff] %v1704_v32  ;;  %v2923_v17 = vpop.f32.mrf.mxu2  ;;  %v2211_v61 = vor.u32 %v2358_v4, %v2210_v63  ;;  %v1334_v63 = vadd.f32 %v2915_v12, %v2819_v37 }
 0x2e8   : > { %v1511_v48 = vpop.f32.mrf.mxu1 }
 0x2e9   : > { %v1497_v45 = vadd.f32 %v1496_v54, %v1408_v2  ;;  %v2228_v54 = vld [vmem:[%s2656_s8 + $0x1b8] sm:$0xf0]  ;;  %v2364_v2 = vld [vmem:[%s2656_s8 + $0x1cc] sm:$0xf] }
 0x2ea   : > { %v2231_v0 = vor.u32 %v2360_v33, %v2228_v54  ;;  %v1331_v33 = vadd.f32 %v2907_v50, %v2808_v19 }
 0x2eb   : > { %v1673_v27 = vadd.f32 %v2884_v13, %v1497_v45 }
 0x2ec   : > { %1550 = vmatmul.bf16.gmra.mxu1 %v2231_v0 }
 0x2ed   : > { %v1705_v39 = vmax.f32 %v1673_v27, 0.0 }
 0x2ee   : > { %v1409_v38 = vpop.f32.mrf.mxu3 }
 0x2ef   : > { %v1410_v43 = vadd.f32 %v1409_v38, %v2816_v29  ;;  %1737 = vst [vmem:[%s2893_s20 + $0x20] sm:$0xff] %v1705_v39  ;;  %v2930_v57 = vpop.f32.mrf.mxu2 }
 0x2f0   : > { %v1513_v56 = vpop.f32.mrf.mxu1 }
 0x2f1   : > { %v1499_v30 = vadd.f32 %v1498_v5, %v1410_v43  ;;  %v2226_v43 = vld [vmem:[%s2656_s8 + $0x1a8] sm:$0xf] }
 0x2f3   : > { %1451 = vmatmul.bf16.gmra.mxu3 %v2195_v23  ;;  %v1674_v52 = vadd.f32 %v2884_v13, %v1499_v30  ;;  %v2362_v23 = vld [vmem:[%s2656_s8 + $0x1b4] sm:$0xf0] }
 0x2f5   : > { %v1706_v53 = vmax.f32 %v1674_v52, 0.0  ;;  %v2227_v52 = vor.u32 %v2362_v23, %v2226_v43  ;;  %v2258_v23 = vld [vmem:[%s2656_s8 + $0x1e8] sm:$0xf] }
 0x2f6   : > { %v1412_v58 = vpop.f32.mrf.mxu3 }
 0x2f7   : > { %v1413_v29 = vadd.f32 %v1412_v58, %v2822_v40  ;;  %1738 = vst [vmem:[%s2893_s20 + $0x28] sm:$0xff] %v1706_v53  ;;  %v1340_v27 = vpop.f32.mrf.mxu2 }
 0x2f8   : > { %v1516_v40 = vpop.f32.mrf.mxu1 }
 0x2f9   : > { %v1502_v5 = vadd.f32 %v1501_v34, %v1413_v29  ;;  %v2244_v34 = vld [vmem:[%s2656_s8 + $0x1d8] sm:$0xf0]  ;;  %v2368_v29 = vld [vmem:[%s2656_s8 + $0x1ec] sm:$0xf] }
 0x2fa   : > { %v2247_v45 = vor.u32 %v2364_v2, %v2244_v34 }
 0x2fb   : > { %v1675_v6 = vadd.f32 %v2884_v13, %v1502_v5 }
 0x2fc   : > { %1555 = vmatmul.bf16.gmra.mxu1 %v2247_v45 }
 0x2fd   : > { %v1707_v7 = vmax.f32 %v1675_v6, 0.0 }
 0x2fe   : > { %v1414_v8 = vpop.f32.mrf.mxu3 }
 0x2ff   : > { %v1415_v16 = vadd.f32 %v1414_v8, %v2832_v20  ;;  %1739 = vst [vmem:[%s2893_s20 + $0x30] sm:$0xff] %v1707_v7  ;;  %v1343_v58 = vpop.f32.mrf.mxu2 }
 0x300   : > { %v1518_v30 = vpop.f32.mrf.mxu1 }
 0x301   : > { %v1504_v32 = vadd.f32 %v1503_v18, %v1415_v16 }
 0x303   : > { %1456 = vmatmul.bf16.gmra.mxu3 %v2211_v61  ;;  %v1676_v26 = vadd.f32 %v2884_v13, %v1504_v32  ;;  %v2366_v61 = vld [vmem:[%s2656_s8 + $0x1d4] sm:$0xf0]  ;;  %v1336_v32 = vadd.f32 %v2923_v17, %v2826_v42 }
 0x305   : > { %v1708_v38 = vmax.f32 %v1676_v26, 0.0 }
 0x306   : > { %v1417_v20 = vpop.f32.mrf.mxu3 }
 0x307   : > { %v1418_v39 = vadd.f32 %v1417_v20, %v1329_v24  ;;  %1740 = vst [vmem:[%s2893_s20 + $0x38] sm:$0xff] %v1708_v38  ;;  %v1345_v16 = vpop.f32.mrf.mxu2  ;;  %v1339_v20 = vadd.f32 %v2930_v57, %v2837_v47 }
 0x308   : > { %v1521_v4 = vpop.f32.mrf.mxu1 }
 0x309   : > { %v1507_v18 = vadd.f32 %v1506_v59, %v1418_v39  ;;  %v2260_v59 = vld [vmem:[%s2656_s8 + $0x1f8] sm:$0xf0] }
 0x30a   : > { %v2263_v5 = vor.u32 %v2368_v29, %v2260_v59 }
 0x30b   : > { %v1677_v15 = vadd.f32 %v2884_v13, %v1507_v18 }
 0x30c   : > { %1560 = vmatmul.bf16.gmra.mxu1 %v2263_v5 }
 0x30d   : > { %v1709_v54 = vmax.f32 %v1677_v15, 0.0  ;;  %v1341_v15 = vadd.f32 %v1340_v27, %v2840_v60 }
 0x30e   : > { %v1419_v35 = vpop.f32.mrf.mxu3 }
 0x30f   : > { %v1420_v0 = vadd.f32 %v1419_v35, %v1331_v33  ;;  %1741 = vst [vmem:[%s2893_s20 + $0x40] sm:$0xff] %v1709_v54  ;;  %v2370_v33 = vld [vmem:[%s2656_s8 + $0x1f4] sm:$0xf0] }
 0x310   : > { %v1523_v24 = vpop.f32.mrf.mxu1  ;;  %v2259_v57 = vor.u32 %v2370_v33, %v2258_v23 }
 0x311   : > { %v1509_v53 = vadd.f32 %v1508_v22, %v1420_v0  ;;  %v2242_v22 = vld [vmem:[%s2656_s8 + $0x1c8] sm:$0xf] }
 0x312   : > { %v2243_v45 = vor.u32 %v2366_v61, %v2242_v22 }
 0x313   : > { %1461 = vmatmul.bf16.gmra.mxu3 %v2227_v52  ;;  %v1678_v19 = vadd.f32 %v2884_v13, %v1509_v53 }
 0x315   : > { %v1710_v6 = vmax.f32 %v1678_v19, 0.0  ;;  %v1346_v19 = vadd.f32 %v1345_v16, %v2854_v10 }
 0x316   : > { %v1422_v50 = vpop.f32.mrf.mxu3 }
 0x317   : > { %v1423_v8 = vadd.f32 %v1422_v50, %v1334_v63  ;;  %1742 = vst [vmem:[%s2893_s20 + $0x48] sm:$0xff] %v1710_v6 }
 0x318   : > { %v1526_v43 = vpop.f32.mrf.mxu1 }
 0x319   : > { %v1512_v7 = vadd.f32 %v1511_v48, %v1423_v8  ;;  %v1348_v48 = vpop.f32.mrf.mxu2 }
 0x31b   : > { %v1679_v2 = vadd.f32 %v2884_v13, %v1512_v7 }
 0x31d   : > { %v1711_v12 = vmax.f32 %v1679_v2, 0.0 }
 0x31e   : > { %v1424_v37 = vpop.f32.mrf.mxu3 }
 0x31f   : > { %v1425_v34 = vadd.f32 %v1424_v37, %v1336_v32  ;;  %1743 = vst [vmem:[%s2893_s20 + $0x50] sm:$0xff] %v1711_v12 }
 0x320   : > { %v1528_v53 = vpop.f32.mrf.mxu1 }
 0x321   : > { %v1514_v26 = vadd.f32 %v1513_v56, %v1425_v34  ;;  %v1350_v35 = vpop.f32.mrf.mxu2 }
 0x322   : > { %v1351_v12 = vadd.f32 %v1350_v35, %v2753_v36 }
 0x323   : > { %1466 = vmatmul.bf16.gmra.mxu3 %v2243_v45  ;;  %v1680_v38 = vadd.f32 %v2884_v13, %v1514_v26 }
 0x325   : > { %v1712_v17 = vmax.f32 %v1680_v38, 0.0 }
 0x326   : > { %v1427_v42 = vpop.f32.mrf.mxu3 }
 0x327   : > { %v1428_v39 = vadd.f32 %v1427_v42, %v1339_v20  ;;  %1744 = vst [vmem:[%s2893_s20 + $0x58] sm:$0xff] %v1712_v17 }
 0x329   : > { %v1517_v18 = vadd.f32 %v1516_v40, %v1428_v39  ;;  %v1344_v40 = vadd.f32 %v1343_v58, %v2849_v3  ;;  %v1353_v27 = vpop.f32.mrf.mxu2  ;;  %v1349_v58 = vadd.f32 %v1348_v48, %v2747_v25 }
 0x32a   : > { %v1354_v48 = vadd.f32 %v1353_v27, %v2769_v44 }
 0x32b   : > { %v1681_v56 = vadd.f32 %v2884_v13, %v1517_v18 }
 0x32d   : > { %v1713_v0 = vmax.f32 %v1681_v56, 0.0 }
 0x32e   : > { %v1429_v54 = vpop.f32.mrf.mxu3 }
 0x32f   : > { %v1430_v47 = vadd.f32 %v1429_v54, %v1341_v15  ;;  %1745 = vst [vmem:[%s2893_s20 + $0x60] sm:$0xff] %v1713_v0 }
 0x331   : > { %v1519_v52 = vadd.f32 %v1518_v30, %v1430_v47  ;;  %v1531_v30 = vpop.f32.mrf.mxu1  ;;  %v1355_v3 = vpop.f32.mrf.mxu2 }
 0x332   : > { %v1356_v23 = vadd.f32 %v1355_v3, %v2776_v14 }
 0x333   : > { %1471 = vmatmul.bf16.gmra.mxu3 %v2259_v57  ;;  %v1682_v29 = vadd.f32 %v2884_v13, %v1519_v52 }
 0x335   : > { %v1714_v5 = vmax.f32 %v1682_v29, 0.0 }
 0x336   : > { %v1432_v59 = vpop.f32.mrf.mxu3 }
 0x337   : > { %v1433_v60 = vadd.f32 %v1432_v59, %v1344_v40  ;;  %1746 = vst [vmem:[%s2893_s20 + $0x68] sm:$0xff] %v1714_v5 }
 0x339   : > { %v1522_v63 = vadd.f32 %v1521_v4, %v1433_v60  ;;  %v1533_v37 = vpop.f32.mrf.mxu1  ;;  %v1358_v16 = vpop.f32.mrf.mxu2 }
 0x33a   : > { %v1359_v0 = vadd.f32 %v1358_v16, %v2786_v51 }
 0x33b   : > { %v1683_v50 = vadd.f32 %v2884_v13, %v1522_v63 }
 0x33d   : > { %v1715_v8 = vmax.f32 %v1683_v50, 0.0 }
 0x33e   : > { %v1434_v6 = vpop.f32.mrf.mxu3 }
 0x33f   : > { %v1435_v7 = vadd.f32 %v1434_v6, %v1346_v19  ;;  %1747 = vst [vmem:[%s2893_s20 + $0x70] sm:$0xff] %v1715_v8 }
 0x341   : > { %v1524_v22 = vadd.f32 %v1523_v24, %v1435_v7  ;;  %v1536_v25 = vpop.f32.mrf.mxu1  ;;  %v1360_v42 = vpop.f32.mrf.mxu2 }
 0x342   : > { %v1361_v59 = vadd.f32 %v1360_v42, %v2792_v62 }
 0x343   : > { %v1684_v61 = vadd.f32 %v2884_v13, %v1524_v22 }
 0x345   : > { %v1716_v2 = vmax.f32 %v1684_v61, 0.0 }
 0x346   : > { %v1437_v32 = vpop.f32.mrf.mxu3 }
 0x347   : > { %v1438_v4 = vadd.f32 %v1437_v32, %v1349_v58  ;;  %1748 = vst [vmem:[%s2893_s20 + $0x78] sm:$0xff] %v1716_v2 }
 0x349   : > { %v1527_v10 = vadd.f32 %v1526_v43, %v1438_v4  ;;  %v1538_v36 = vpop.f32.mrf.mxu1  ;;  %v1363_v54 = vpop.f32.mrf.mxu2 }
 0x34a   : > { %v1364_v6 = vadd.f32 %v1363_v54, %v2804_v1 }
 0x34b   : > { %v1685_v34 = vadd.f32 %v2884_v13, %v1527_v10 }
 0x34d   : > { %v1717_v24 = vmax.f32 %v1685_v34, 0.0 }
 0x34e   : > { %v1439_v45 = vpop.f32.mrf.mxu3 }
 0x34f   : > { %v1440_v26 = vadd.f32 %v1439_v45, %v1351_v12  ;;  %1749 = vst [vmem:[%s2893_s20 + $0x80] sm:$0xff] %v1717_v24 }
 0x351   : > { %v1529_v20 = vadd.f32 %v1528_v53, %v1440_v26  ;;  %v1541_v52 = vpop.f32.mrf.mxu1  ;;  %v1365_v14 = vpop.f32.mrf.mxu2 }
 0x352   : > { %v1366_v58 = vadd.f32 %v1365_v14, %v2814_v28 }
 0x353   : > { %v1686_v38 = vadd.f32 %v2884_v13, %v1529_v20 }
 0x355   : > { %v1718_v39 = vmax.f32 %v1686_v38, 0.0 }
 0x356   : > { %v1442_v17 = vpop.f32.mrf.mxu3 }
 0x357   : > { %v1443_v18 = vadd.f32 %v1442_v17, %v1354_v48  ;;  %1750 = vst [vmem:[%s2893_s20 + $0x88] sm:$0xff] %v1718_v39 }
 0x359   : > { %v1532_v43 = vadd.f32 %v1531_v30, %v1443_v18  ;;  %v1543_v19 = vpop.f32.mrf.mxu1  ;;  %v1368_v50 = vpop.f32.mrf.mxu2 }
 0x35a   : > { %v1369_v16 = vadd.f32 %v1368_v50, %v2824_v41 }
 0x35b   : > { %v1687_v33 = vadd.f32 %v2884_v13, %v1532_v43 }
 0x35d   : > { %v1719_v56 = vmax.f32 %v1687_v33, 0.0 }
 0x35e   : > { %v1444_v15 = vpop.f32.mrf.mxu3 }
 0x35f   : > { %v1445_v35 = vadd.f32 %v1444_v15, %v1356_v23  ;;  %1751 = vst [vmem:[%s2893_s20 + $0x90] sm:$0xff] %v1719_v56 }
 0x361   : > { %v1534_v44 = vadd.f32 %v1533_v37, %v1445_v35  ;;  %v1546_v62 = vpop.f32.mrf.mxu1  ;;  %v1370_v32 = vpop.f32.mrf.mxu2 }
 0x362   : > { %v1371_v20 = vadd.f32 %v1370_v32, %v2835_v46 }
 0x363   : > { %v1688_v47 = vadd.f32 %v2884_v13, %v1534_v44 }
 0x365   : > { %v1720_v53 = vmax.f32 %v1688_v47, 0.0 }
 0x366   : > { %v1447_v57 = vpop.f32.mrf.mxu3 }
 0x367   : > { %v1448_v40 = vadd.f32 %v1447_v57, %v1359_v0  ;;  %1752 = vst [vmem:[%s2893_s20 + $0x98] sm:$0xff] %v1720_v53 }
 0x369   : > { %v1537_v29 = vadd.f32 %v1536_v25, %v1448_v40  ;;  %v1548_v1 = vpop.f32.mrf.mxu1  ;;  %v1373_v26 = vpop.f32.mrf.mxu2 }
 0x36a   : > { %v1374_v18 = vadd.f32 %v1373_v26, %v2846_v55 }
 0x36b   : > { %v1689_v5 = vadd.f32 %v2884_v13, %v1537_v29 }
 0x36d   : > { %v1721_v27 = vmax.f32 %v1689_v5, 0.0 }
 0x36e   : > { %v1449_v60 = vpop.f32.mrf.mxu3 }
 0x36f   : > { %v1450_v63 = vadd.f32 %v1449_v60, %v1361_v59  ;;  %1753 = vst [vmem:[%s2893_s20 + $0xa0] sm:$0xff] %v1721_v27 }
 0x371   : > { %v1539_v51 = vadd.f32 %v1538_v36, %v1450_v63  ;;  %v1551_v38 = vpop.f32.mrf.mxu1  ;;  %v1375_v41 = vpop.f32.mrf.mxu2 }
 0x372   : > { %v1376_v35 = vadd.f32 %v1375_v41, %v2852_v9 }
 0x373   : > { %v1690_v30 = vadd.f32 %v2884_v13, %v1539_v51 }
 0x375   : > { %v1722_v7 = vmax.f32 %v1690_v30, 0.0 }
 0x376   : > { %v1452_v8 = vpop.f32.mrf.mxu3 }
 0x377   : > { %v1453_v22 = vadd.f32 %v1452_v8, %v1364_v6  ;;  %1754 = vst [vmem:[%s2893_s20 + $0xa8] sm:$0xff] %v1722_v7 }
 0x379   : > { %v1542_v3 = vadd.f32 %v1541_v52, %v1453_v22  ;;  %v1553_v15 = vpop.f32.mrf.mxu1  ;;  %v1378_v56 = vpop.f32.mrf.mxu2 }
 0x37a   : > { %v1379_v52 = vadd.f32 %v1378_v56, %v2860_v21 }
 0x37b   : > { %v1691_v61 = vadd.f32 %v2884_v13, %v1542_v3 }
 0x37d   : > { %v1723_v4 = vmax.f32 %v1691_v61, 0.0 }
 0x37e   : > { %v1454_v2 = vpop.f32.mrf.mxu3 }
 0x37f   : > { %v1455_v37 = vadd.f32 %v1454_v2, %v1366_v58  ;;  %1755 = vst [vmem:[%s2893_s20 + $0xb0] sm:$0xff] %v1723_v4 }
 0x381   : > { %v1544_v10 = vadd.f32 %v1543_v19, %v1455_v37  ;;  %v1556_v55 = vpop.f32.mrf.mxu1  ;;  %v1380_v40 = vpop.f32.mrf.mxu2 }
 0x382   : > { %v1381_v60 = vadd.f32 %v1380_v40, %v2864_v31 }
 0x383   : > { %v1692_v12 = vadd.f32 %v2884_v13, %v1544_v10 }
 0x385   : > { %v1724_v45 = vmax.f32 %v1692_v12, 0.0 }
 0x386   : > { %v1457_v34 = vpop.f32.mrf.mxu3 }
 0x387   : > { %v1458_v24 = vadd.f32 %v1457_v34, %v1369_v16  ;;  %1756 = vst [vmem:[%s2893_s20 + $0xb8] sm:$0xff] %v1724_v45 }
 0x389   : > { %v1547_v28 = vadd.f32 %v1546_v62, %v1458_v24  ;;  %v1558_v9 = vpop.f32.mrf.mxu1  ;;  %v1383_v50 = vpop.f32.mrf.mxu2 }
 0x38a   : > { %v1384_v6 = vadd.f32 %v1383_v50, %v2872_v11 }
 0x38b   : > { %v1693_v25 = vadd.f32 %v2884_v13, %v1547_v28 }
 0x38d   : > { %v1725_v42 = vmax.f32 %v1693_v25, 0.0 }
 0x38e   : > { %v1459_v48 = vpop.f32.mrf.mxu3 }
 0x38f   : > { %v1460_v17 = vadd.f32 %v1459_v48, %v1371_v20  ;;  %1757 = vst [vmem:[%s2893_s20 + $0xc0] sm:$0xff] %v1725_v42 }
 0x391   : > { %v1549_v39 = vadd.f32 %v1548_v1, %v1460_v17  ;;  %v1561_v7 = vpop.f32.mrf.mxu1  ;;  %v1385_v62 = vpop.f32.mrf.mxu2 }
 0x392   : > { %v1386_v58 = vadd.f32 %v1385_v62, %v2876_v49 }
 0x393   : > { %v1694_v43 = vadd.f32 %v2884_v13, %v1549_v39 }
 0x395   : > { %v1726_v23 = vmax.f32 %v1694_v43, 0.0 }
 0x396   : > { %v1462_v36 = vpop.f32.mrf.mxu3 }
 0x397   : > { %v1463_v33 = vadd.f32 %v1462_v36, %v1374_v18  ;;  %1758 = vst [vmem:[%s2893_s20 + $0xc8] sm:$0xff] %v1726_v23 }
 0x399   : > { %v1552_v46 = vadd.f32 %v1551_v38, %v1463_v33  ;;  %v1563_v37 = vpop.f32.mrf.mxu1 }
 0x39b   : > { %v1695_v54 = vadd.f32 %v2884_v13, %v1552_v46 }
 0x39d   : > { %v1727_v0 = vmax.f32 %v1695_v54, 0.0 }
 0x39e   : > { %v1464_v44 = vpop.f32.mrf.mxu3 }
 0x39f   : > { %v1465_v47 = vadd.f32 %v1464_v44, %v1376_v35  ;;  %1759 = vst [vmem:[%s2893_s20 + $0xd0] sm:$0xff] %v1727_v0 }
 0x3a1   : > { %v1554_v57 = vadd.f32 %v1553_v15, %v1465_v47 }
 0x3a3   : > { %v1696_v53 = vadd.f32 %v2884_v13, %v1554_v57 }
 0x3a5   : > { %v1728_v14 = vmax.f32 %v1696_v53, 0.0 }
 0x3a6   : > { %v1467_v29 = vpop.f32.mrf.mxu3 }
 0x3a7   : > { %v1468_v59 = vadd.f32 %v1467_v29, %v1379_v52  ;;  %1760 = vst [vmem:[%s2893_s20 + $0xd8] sm:$0xff] %v1728_v14 }
 0x3a9   : > { %v1557_v5 = vadd.f32 %v1556_v55, %v1468_v59 }
 0x3ab   : > { %v1697_v27 = vadd.f32 %v2884_v13, %v1557_v5 }
 0x3ad   : > { %v1729_v19 = vmax.f32 %v1697_v27, 0.0 }
 0x3ae   : > { %v1469_v63 = vpop.f32.mrf.mxu3 }
 0x3af   : > { %v1470_v51 = vadd.f32 %v1469_v63, %v1381_v60  ;;  %1761 = vst [vmem:[%s2893_s20 + $0xe0] sm:$0xff] %v1729_v19 }
 0x3b1   : > { %v1559_v21 = vadd.f32 %v1558_v9, %v1470_v51 }
 0x3b3   : > { %v1698_v30 = vadd.f32 %v2884_v13, %v1559_v21 }
 0x3b5   : > { %v1730_v22 = vmax.f32 %v1698_v30, 0.0 }
 0x3b6   : > { %v1472_v8 = vpop.f32.mrf.mxu3 }
 0x3b7   : > { %v1473_v3 = vadd.f32 %v1472_v8, %v1384_v6  ;;  %1762 = vst [vmem:[%s2893_s20 + $0xe8] sm:$0xff] %v1730_v22 }
 0x3b9   : > { %v1562_v31 = vadd.f32 %v1561_v7, %v1473_v3 }
 0x3bb   : > { %v1699_v61 = vadd.f32 %v2884_v13, %v1562_v31 }
 0x3bd   : > { %v1731_v2 = vmax.f32 %v1699_v61, 0.0 }
 0x3be   : > { %v1474_v32 = vpop.f32.mrf.mxu3 }
 0x3bf   : > { %v1475_v4 = vadd.f32 %v1474_v32, %v1386_v58  ;;  %1763 = vst [vmem:[%s2893_s20 + $0xf0] sm:$0xff] %v1731_v2 }
 0x3c1   : > { %v1564_v11 = vadd.f32 %v1563_v37, %v1475_v4 }
 0x3c3   : > { %v1700_v10 = vadd.f32 %v2884_v13, %v1564_v11 }
 0x3c5   : > { %v1732_v1 = vmax.f32 %v1700_v10, 0.0 }
 0x3c7   : > { %1764 = vst [vmem:[%s2893_s20 + $0xf8] sm:$0xff] %v1732_v1 }
 0x3c8 PF: > { %s14_s17 = sadd.s32 1, %s2435_s17   ;;  %s3040_s15 = smov %s2431_s16 }
 0x3c9   : > { %p11_p5 = scmp.ge.s32.totalorder %s14_s17, 4   ;;  %s3041_s16 = smov %s3043_s18 }
 0x3cb   :  { %13 = sbr.rel (!%p11_p5) target bundleno = 2 (0x2), region = 75 }

</bundles_post_ra>
